<compile_context>
chip_gen: v6e
topology: v6e:2x2x1
jax: 0.10.0
libtpu: 0.0.40
codegen_flags: <defaults>
</compile_context>

<pallas_src>
import jax
import jax.numpy as jnp
from jax.experimental import pallas as pl
from jax.experimental.pallas import tpu as pltpu

_IN = 28 * 28      # 784
_HID = 32
_OUT = 10
_TB_MAX = 4096     # max batch-tile rows (f32 x: ~28.7 MiB double-buffered)


def _mlp_kernel(x_ref, w1_ref, b1_ref, w2_ref, b2_ref, o_ref):
    # x arrives f32; cast to bf16 on the VPU right before the MXU matmul
    # (never run the (TB,784)@(784,32) matmul in f32 — 2-4x MXU cost).
    x_bf = x_ref[...].astype(jnp.bfloat16)
    # fc1: (TB, 784)bf16 @ (784, 32)bf16 -> f32 accumulate, + (1, 32)f32 bias
    h = jnp.dot(x_bf, w1_ref[...], preferred_element_type=jnp.float32)
    h = h + b1_ref[...]
    # self_relu: where(x > 0, x, eps) with eps = 0.001 (constant, NOT a leaky scale)
    h = jnp.where(h > 0, h, jnp.float32(0.001))
    # fc2: (TB, 32)f32 @ (32, 10)f32 + (1, 10)f32 bias  (tiny; keep full f32)
    out = jnp.dot(h, w2_ref[...], preferred_element_type=jnp.float32)
    out = out + b2_ref[...]
    o_ref[...] = out.astype(o_ref.dtype)


def _round_up(x, m):
    return ((x + m - 1) // m) * m


def _pick_batch_tile(B):
    """Pick (tb, grid) giving >=2 (even) tiles when possible, capped at _TB_MAX."""
    if B <= 16:
        # Full-extent block (valid even when B is not a multiple of 8).
        return B, (1,)
    n_tiles = max(2, pl.cdiv(B, _TB_MAX))
    if n_tiles % 2:
        n_tiles += 1                       # even tile count for 2-TC v7x
    tb = min(_TB_MAX, _round_up(pl.cdiv(B, n_tiles), 16))
    return tb, (pl.cdiv(B, tb),)


def linear_nn_forward(x_nchw, w1, b1, w2, b2):
    """Forward pass of LinearNN.

    x_nchw: (B, 1, 28, 28) float32
    w1: (784, 32), b1: (32,), w2: (32, 10), b2: (10,)
    returns: (B, 10) float32
    """
    B = x_nchw.shape[0]
    # nn.Flatten -> (B, 784). NOTE: no dtype cast here — x goes to the kernel
    # as f32 and is cast to bf16 on-chip (no extra HBM pass).
    x_flat = x_nchw.reshape(B, -1).astype(jnp.float32)
    w1_bf = w1.astype(jnp.bfloat16)                # (784, 32) bf16 (tiny, one-off)
    b1_2d = b1.reshape(1, -1).astype(jnp.float32)  # (1, 32)  f32
    w2_f32 = w2.astype(jnp.float32)                # (32, 10) f32
    b2_2d = b2.reshape(1, -1).astype(jnp.float32)  # (1, 10)  f32

    tb, grid = _pick_batch_tile(B)

    flops = 2 * B * (_IN * _HID + _HID * _OUT)
    bytes_accessed = (
        B * _IN * 4                      # x stream (f32 into the kernel)
        + B * _OUT * 4                   # output (f32)
        + _IN * _HID * 2 + _HID * 4      # w1 (bf16) + b1 (f32)
        + _HID * _OUT * 4 + _OUT * 4     # w2 + b2 (f32)
    )

    out = pl.pallas_call(
        _mlp_kernel,
        out_shape=jax.ShapeDtypeStruct((B, _OUT), jnp.float32),
        grid=grid,
        in_specs=[
            # x: streamed, double-buffered batch tiles
            pl.BlockSpec((tb, _IN), lambda i: (i, 0)),
            # weights/biases: full-shape blocks, constant index -> DMA'd once,
            # resident in VMEM for the whole grid
            pl.BlockSpec((_IN, _HID), lambda i: (0, 0)),
            pl.BlockSpec((1, _HID), lambda i: (0, 0)),
            pl.BlockSpec((_HID, _OUT), lambda i: (0, 0)),
            pl.BlockSpec((1, _OUT), lambda i: (0, 0)),
        ],
        out_specs=pl.BlockSpec((tb, _OUT), lambda i: (i, 0)),
        compiler_params=pltpu.CompilerParams(
            dimension_semantics=("parallel",),   # shard batch tiles across TCs (v7x)
            vmem_limit_bytes=56 * 1024 * 1024,   # headroom for 4096-row f32 x tiles
        ),
        cost_estimate=pl.CostEstimate(
            flops=flops, transcendentals=0, bytes_accessed=bytes_accessed),
    )(x_flat, w1_bf, b1_2d, w2_f32, b2_2d)
    return out


def _reference_forward(x_nchw, w1, b1, w2, b2):
    # Pure f32 reference (matches the PyTorch module's math).
    x = x_nchw.reshape(x_nchw.shape[0], -1)
    h = x @ w1 + b1
    h = jnp.where(h > 0, h, jnp.float32(0.001))
    return h @ w2 + b2


if __name__ == "__main__":
    key = jax.random.PRNGKey(0)
    k_x, k_w1, k_b1, k_w2, k_b2 = jax.random.split(key, 5)

    B = 2
    # Deterministic synthetic parameters (PyTorch-Linear-like uniform bounds).
    bound1 = 1.0 / jnp.sqrt(784.0)
    bound2 = 1.0 / jnp.sqrt(32.0)
    x = jax.random.normal(k_x, (B, 1, 28, 28), dtype=jnp.float32)
    w1 = jax.random.uniform(k_w1, (784, 32), jnp.float32, -bound1, bound1)
    b1 = jax.random.uniform(k_b1, (32,), jnp.float32, -bound1, bound1)
    w2 = jax.random.uniform(k_w2, (32, 10), jnp.float32, -bound2, bound2)
    b2 = jax.random.uniform(k_b2, (10,), jnp.float32, -bound2, bound2)

    out = linear_nn_forward(x, w1, b1, w2, b2)
    out = jax.block_until_ready(out)

    ref = _reference_forward(x, w1, b1, w2, b2)
    assert out.shape == (B, 10), out.shape
    # Tolerance loosened vs the pure-f32 reference because x/w1 hit the MXU in
    # bf16 (f32 accumulation); error on this stack is <~1% relative.
    assert jnp.allclose(out, ref, atol=5e-2, rtol=5e-2), "mismatch vs reference"

    print("KERNEL_OK")
</pallas_src>

<mosaic_0001>
module attributes {stable_mosaic.version = 11 : i64} {
  func.func @_mlp_kernel(%arg0: i32, %arg1: memref<2x784xf32, #tpu.memory_space<vmem>>, %arg2: memref<784x32xbf16, #tpu.memory_space<vmem>>, %arg3: memref<1x32xf32, #tpu.memory_space<vmem>>, %arg4: memref<32x10xf32, #tpu.memory_space<vmem>>, %arg5: memref<1x10xf32, #tpu.memory_space<vmem>>, %arg6: memref<2x10xf32, #tpu.memory_space<vmem>>) attributes {dimension_semantics = [#tpu.dimension_semantics<parallel>], iteration_bounds = array<i64: 1>, scalar_prefetch = 0 : i64, scratch_operands = 0 : i64, tpu.core_type = #tpu.core_type<tc>, window_params = [{transform_indices = @transform_0, window_bounds = array<i64: 2, 784>}, {pipeline_mode = #tpu.pipeline_mode<synchronous>, transform_indices = @transform_1, window_bounds = array<i64: 784, 32>}, {pipeline_mode = #tpu.pipeline_mode<synchronous>, transform_indices = @transform_2, window_bounds = array<i64: 1, 32>}, {pipeline_mode = #tpu.pipeline_mode<synchronous>, transform_indices = @transform_3, window_bounds = array<i64: 32, 10>}, {pipeline_mode = #tpu.pipeline_mode<synchronous>, transform_indices = @transform_4, window_bounds = array<i64: 1, 10>}, {transform_indices = @transform_5, window_bounds = array<i64: 2, 10>}]} {
    %c0 = arith.constant 0 : index
    %c0_0 = arith.constant 0 : index
    %0 = vector.load %arg1[%c0, %c0_0] : memref<2x784xf32, #tpu.memory_space<vmem>>, vector<2x784xf32>
    %1 = arith.truncf %0 : vector<2x784xf32> to vector<2x784xbf16>
    %c0_1 = arith.constant 0 : index
    %c0_2 = arith.constant 0 : index
    %2 = vector.load %arg2[%c0_1, %c0_2] : memref<784x32xbf16, #tpu.memory_space<vmem>>, vector<784x32xbf16>
    %cst = arith.constant dense<0.000000e+00> : vector<2x32xf32>
    %3 = tpu.matmul %1, %2, %cst {dimension_numbers = #tpu.dot_dimension_numbers<[1], [0], [0], [1], [0, 0, 1, 1], [], []>} : vector<2x784xbf16>, vector<784x32xbf16>, vector<2x32xf32> -> vector<2x32xf32>
    %c0_3 = arith.constant 0 : index
    %c0_4 = arith.constant 0 : index
    %4 = vector.load %arg3[%c0_3, %c0_4] : memref<1x32xf32, #tpu.memory_space<vmem>>, vector<1x32xf32>
    %5 = vector.broadcast %4 : vector<1x32xf32> to vector<2x32xf32>
    %6 = arith.addf %3, %5 : vector<2x32xf32>
    %cst_5 = arith.constant 0.000000e+00 : f32
    %7 = vector.broadcast %cst_5 : f32 to vector<2x32xf32>
    %8 = arith.cmpf ogt, %6, %7 : vector<2x32xf32>
    %cst_6 = arith.constant 1.000000e-03 : f32
    %9 = vector.broadcast %cst_6 : f32 to vector<2x32xf32>
    %10 = arith.select %8, %6, %9 : vector<2x32xi1>, vector<2x32xf32>
    %c0_7 = arith.constant 0 : index
    %c0_8 = arith.constant 0 : index
    %11 = vector.load %arg4[%c0_7, %c0_8] : memref<32x10xf32, #tpu.memory_space<vmem>>, vector<32x10xf32>
    %cst_9 = arith.constant dense<0.000000e+00> : vector<2x10xf32>
    %12 = tpu.matmul %10, %11, %cst_9 {dimension_numbers = #tpu.dot_dimension_numbers<[1], [0], [0], [1], [0, 0, 1, 1], [], []>} : vector<2x32xf32>, vector<32x10xf32>, vector<2x10xf32> -> vector<2x10xf32>
    %c0_10 = arith.constant 0 : index
    %c0_11 = arith.constant 0 : index
    %13 = vector.load %arg5[%c0_10, %c0_11] : memref<1x10xf32, #tpu.memory_space<vmem>>, vector<1x10xf32>
    %14 = vector.broadcast %13 : vector<1x10xf32> to vector<2x10xf32>
    %15 = arith.addf %12, %14 : vector<2x10xf32>
    %c0_12 = arith.constant 0 : index
    %c0_13 = arith.constant 0 : index
    %16 = vector.load %arg6[%c0_12, %c0_13] : memref<2x10xf32, #tpu.memory_space<vmem>>, vector<2x10xf32>
    tpu.vector_store %arg6[%c0_12, %c0_13], %15 {strides = array<i32>} : memref<2x10xf32, #tpu.memory_space<vmem>>, vector<2x10xf32>,
    return
  }
  func.func @transform_0(%arg0: i32) -> (i32, i32) {
    %c0_i32 = arith.constant 0 : i32
    %c0_i32_0 = arith.constant 0 : i32
    return %arg0, %c0_i32 : i32, i32
  }
  func.func @transform_1(%arg0: i32) -> (i32, i32) {
    %c0_i32 = arith.constant 0 : i32
    %c0_i32_0 = arith.constant 0 : i32
    %c0_i32_1 = arith.constant 0 : i32
    return %c0_i32, %c0_i32_0 : i32, i32
  }
  func.func @transform_2(%arg0: i32) -> (i32, i32) {
    %c0_i32 = arith.constant 0 : i32
    %c0_i32_0 = arith.constant 0 : i32
    %c0_i32_1 = arith.constant 0 : i32
    return %c0_i32, %c0_i32_0 : i32, i32
  }
  func.func @transform_3(%arg0: i32) -> (i32, i32) {
    %c0_i32 = arith.constant 0 : i32
    %c0_i32_0 = arith.constant 0 : i32
    %c0_i32_1 = arith.constant 0 : i32
    return %c0_i32, %c0_i32_0 : i32, i32
  }
  func.func @transform_4(%arg0: i32) -> (i32, i32) {
    %c0_i32 = arith.constant 0 : i32
    %c0_i32_0 = arith.constant 0 : i32
    %c0_i32_1 = arith.constant 0 : i32
    return %c0_i32, %c0_i32_0 : i32, i32
  }
  func.func @transform_5(%arg0: i32) -> (i32, i32) {
    %c0_i32 = arith.constant 0 : i32
    %c0_i32_0 = arith.constant 0 : i32
    return %arg0, %c0_i32 : i32, i32
  }
}

</mosaic_0001>

<bundles_post_ra>
// kernel: tpu_custom_call.1
= control target key start
LH: loop header
LB: loop body
LE: loop exit
PB: predicated region body
PF: predicated region fallthrough
CT: control target
= control target key end

     0   :  { %v30_v27 = vlaneseq  ;;  %v959_v35 = vmov 1983009808   ;;  %v960_v40 = vmov 0.0   ;;  %vm961_vm0 = vmmov 0   ;;  %s1176_s0 = inlined_call_operand.vmem [shape: f32[2,784], index: 0, kind: input, shape index: {}]   ;;  %s1177_s1 = inlined_call_operand.vmem [shape: bf16[784,32], index: 1, kind: input, shape index: {}]   ;;  %s1178_s2 = inlined_call_operand.vmem [shape: f32[1,32], index: 2, kind: input, shape index: {}]   ;;  %s1179_s3 = inlined_call_operand.vmem [shape: f32[32,10], index: 3, kind: input, shape index: {}]   ;;  %s1180_s4 = inlined_call_operand.vmem [shape: f32[1,10], index: 4, kind: input, shape index: {}]   ;;  %s1181_s5 = inlined_call_operand.hbm [shape: f32[2,10], index: 5, kind: output, shape index: {}]  }
   0x1   :  { %v886_v0 = vld [vmem:[%s1177_s1 + $0x78] sm:$0xff]   ;;  %v890_v4 = vld [vmem:[%s1177_s1 + $0x70] sm:$0xff]   ;;  %v894_v8 = vld [vmem:[%s1177_s1 + $0x68] sm:$0xff]   ;;  %v28_v36 = vunpack.c.l.s4 %v959_v35 }
   0x2   :  { %v887_v1 = vld [vmem:[%s1177_s1 + $0x38] sm:$0xff]   ;;  %792 = vmatprep.subr.bf16.mxu0 %v886_v0  ;;  %v891_v5 = vld [vmem:[%s1177_s1 + $0x30] sm:$0xff]   ;;  %v895_v9 = vld [vmem:[%s1177_s1 + $0x28] sm:$0xff]   ;;  %v31_v32 = vshrl.u32 %v30_v27, 7 }
   0x3   :  { %v888_v2 = vld [vmem:[%s1177_s1 + $0xf8] sm:$0xff]   ;;  %793 = vmatpush3.bf16.msra.mxu0 %v887_v1  ;;  %v892_v6 = vld [vmem:[%s1177_s1 + $0xf0] sm:$0xff]   ;;  %v896_v10 = vld [vmem:[%s1177_s1 + $0xe8] sm:$0xff]   ;;  %v29_v38 = vunpack.c.0.s8 %v28_v36 }
   0x4   :  { %v889_v3 = vld [vmem:[%s1177_s1 + $0xb8] sm:$0xff]   ;;  %814 = vmatprep.subr.bf16.mxu1 %v888_v2  ;;  %794 = vmatprep.subr.bf16.mxu0 %v890_v4  ;;  %v893_v7 = vld [vmem:[%s1177_s1 + $0xb0] sm:$0xff]   ;;  %v897_v11 = vld [vmem:[%s1177_s1 + $0xa8] sm:$0xff]  }
   0x5   :  { %815 = vmatpush3.bf16.msra.mxu1 %v889_v3  ;;  %v898_v12 = vld [vmem:[%s1177_s1 + $0x60] sm:$0xff]   ;;  %v902_v16 = vld [vmem:[%s1177_s1 + $0x58] sm:$0xff]   ;;  %v906_v20 = vld [vmem:[%s1177_s1 + $0x50] sm:$0xff]   ;;  %v32_v41 = vsub.s32 %v29_v38, %v31_v32 }
   0x6   :  { %816 = vmatprep.subr.bf16.mxu1 %v892_v6  ;;  %v899_v13 = vld [vmem:[%s1177_s1 + $0x20] sm:$0xff]   ;;  %v903_v17 = vld [vmem:[%s1177_s1 + $0x18] sm:$0xff]   ;;  %v907_v21 = vld [vmem:[%s1177_s1 + $0x10] sm:$0xff]  }
   0x7   :  { %795 = vmatpush3.bf16.msra.mxu0 %v891_v5  ;;  %v900_v14 = vld [vmem:[%s1177_s1 + $0xe0] sm:$0xff]   ;;  %v904_v18 = vld [vmem:[%s1177_s1 + $0xd8] sm:$0xff]   ;;  %v908_v22 = vld [vmem:[%s1177_s1 + $0xd0] sm:$0xff]  }
   0x8   :  { %796 = vmatprep.subr.bf16.mxu0 %v894_v8  ;;  %v901_v15 = vld [vmem:[%s1177_s1 + $0xa0] sm:$0xff]   ;;  %v905_v19 = vld [vmem:[%s1177_s1 + $0x98] sm:$0xff]   ;;  %v909_v23 = vld [vmem:[%s1177_s1 + $0x90] sm:$0xff]  }
   0x9   :  { %817 = vmatpush3.bf16.msra.mxu1 %v893_v7  ;;  %v910_v24 = vld [vmem:[%s1177_s1 + $0x48] sm:$0xff]   ;;  %v914_v29 = vld [vmem:[%s1177_s1 + $0x40] sm:$0xff]   ;;  %v918_v37 = vld [vmem:[%s1177_s1 + $0x178] sm:$0xff]  }
   0xa   :  { %818 = vmatprep.subr.bf16.mxu1 %v896_v10  ;;  %v911_v25 = vld [vmem:[%s1177_s1 + $0x8] sm:$0xff]   ;;  %v915_v30 = vld [vmem:[%s1177_s1] sm:$0xff]   ;;  %v920_v50 = vld [vmem:[%s1177_s1 + $0x138] sm:$0xff]  }
   0xb   :  { %797 = vmatpush3.bf16.msra.mxu0 %v895_v9  ;;  %v912_v26 = vld [vmem:[%s1177_s1 + $0xc8] sm:$0xff]   ;;  %v916_v31 = vld [vmem:[%s1177_s1 + $0xc0] sm:$0xff]   ;;  %v921_v51 = vld [vmem:[%s1177_s1 + $0x170] sm:$0xff]  }
   0xc   :  { %798 = vmatprep.subr.bf16.mxu0 %v898_v12  ;;  %v913_v28 = vld [vmem:[%s1177_s1 + $0x88] sm:$0xff]   ;;  %v22_v33 = vld [vmem:[%s1176_s0] sm:$0xff]  ;;  %v922_v52 = vld [vmem:[%s1177_s1 + $0x130] sm:$0xff]  }
   0xd   :  { %819 = vmatpush3.bf16.msra.mxu1 %v897_v11  ;;  %v917_v34 = vld [vmem:[%s1177_s1 + $0x80] sm:$0xff]   ;;  %v26_v39 = vcombine.high %v22_v33, %v22_v33  ;;  %v33_v42 = vrot.slane %v22_v33, %v32_v41  ;;  %v923_v53 = vld [vmem:[%s1177_s1 + $0x168] sm:$0xff]  }
   0xe   :  { %820 = vmatprep.subr.bf16.mxu1 %v900_v14  ;;  %v935_v54 = vld [vmem:[%s1177_s1 + $0x180] sm:$0xff]   ;;  %v23_v55 = vld [vmem:[%s1176_s0 + $0x8] sm:$0x3f] }
   0xf   :  { %799 = vmatpush3.bf16.msra.mxu0 %v899_v13  ;;  %v40_v43 = vrot.slane %v26_v39, %v32_v41  ;;  %v41_v44 = vcombine.high %v33_v42, %v33_v42  ;;  %v66_v46 = vpack.c.bf16 %v33_v42, %v33_v42 }
  0x10   :  { %800 = vmatprep.subr.bf16.mxu0 %v902_v16 }
  0x11   :  { %821 = vmatpush3.bf16.msra.mxu1 %v901_v15  ;;  %v42_v45 = vcombine.high %v40_v43, %v40_v43  ;;  %v68_v47 = vpack.c.bf16 %v40_v43, %v40_v43  ;;  %v67_v48 = vpack.c.bf16 %v41_v44, %v41_v44 }
  0x12   :  { %822 = vmatprep.subr.bf16.mxu1 %v904_v18 }
  0x13   :  { %801 = vmatpush3.bf16.msra.mxu0 %v903_v17  ;;  %v69_v49 = vpack.c.bf16 %v42_v45, %v42_v45  ;;  %508 = vmatprep.mubr.bf16.mxu0 %v67_v48 }
  0x14   :  { %802 = vmatprep.subr.bf16.mxu0 %v906_v20 }
  0x15   :  { %823 = vmatpush3.bf16.msra.mxu1 %v905_v19  ;;  %548 = vmatprep.mubr.bf16.mxu1 %v69_v49 }
  0x16   :  { %824 = vmatprep.subr.bf16.mxu1 %v908_v22 }
  0x17   :  { %803 = vmatpush3.bf16.msra.mxu0 %v907_v21 }
  0x18   :  { %804 = vmatprep.subr.bf16.mxu0 %v910_v24 }
  0x19   :  { %825 = vmatpush3.bf16.msra.mxu1 %v909_v23 }
  0x1a   :  { %826 = vmatprep.subr.bf16.mxu1 %v912_v26 }
  0x1b   :  { %805 = vmatpush3.bf16.msra.mxu0 %v911_v25 }
  0x1c   :  { %806 = vmatprep.subr.bf16.mxu0 %v914_v29 }
  0x1d   :  { %827 = vmatpush3.bf16.msra.mxu1 %v913_v28 }
  0x1e   :  { %828 = vmatprep.subr.bf16.mxu1 %v916_v31 }
  0x1f   :  { %807 = vmatpush3.bf16.msra.mxu0 %v915_v30 }
  0x20   :  { %836 = vmatprep.subr.bf16.mxu0 %v918_v37 }
  0x21   :  { %829 = vmatpush3.bf16.msra.mxu1 %v917_v34 }
  0x22   :  { %865 = vmatprep.subr.bf16.mxu1 %v960_v40  ;;  %509 = vmatmul.mubr.bf16.vlgmr.msra.gmra.mxu0 %v66_v46 }
  0x23   :  { %837 = vmatpush3.bf16.msra.mxu0 %v920_v50 }
  0x24   :  { %549 = vmatmul.mubr.bf16.vlgmr.msra.gmra.mxu1 %v68_v47  ;;  %838 = vmatprep.subr.bf16.mxu0 %v921_v51 }
  0x25   :  { %867 = vmatprep.mubr.msk.bf16.mxu1 %vm961_vm0, %v960_v40 }
  0x26   :  { %10 = vsyncpa [#allocation3], 0  ;;  %v924_v56 = vld [vmem:[%s1177_s1 + $0x128] sm:$0xff]   ;;  %v43_v57 = vcombine.high %v23_v55, %v23_v55  ;;  %v50_v58 = vrot.slane %v23_v55, %v32_v41  ;;  %v925_v59 = vld [vmem:[%s1177_s1 + $0x160] sm:$0xff]   ;;  %866 = vmatpush3.bf16.msra.mxu1 %v935_v54  ;;  %vm472_vm1 = vcmask 130048   ;;  %vm649_vm2 = vcmask 261120  }
  0x27   :  { %839 = vmatpush3.bf16.msra.mxu0 %v922_v52  ;;  %871 = vmatprep.subr.mxu1 %v960_v40  ;;  %v926_v62 = vld [vmem:[%s1177_s1 + $0x120] sm:$0xff]   ;;  %v927_v1 = vld [vmem:[%s1177_s1 + $0x158] sm:$0xff]   ;;  %v929_v3 = vld [vmem:[%s1177_s1 + $0x150] sm:$0xff]   ;;  %s962_s28 = smov [#allocation2]   ;;  %vm723_vm4 = vcmask 74752  }
  0x28   :  { %840 = vmatprep.subr.bf16.mxu0 %v923_v53  ;;  %v57_v60 = vrot.slane %v43_v57, %v32_v41  ;;  %v58_v61 = vcombine.high %v50_v58, %v50_v58  ;;  %v928_v2 = vld [vmem:[%s1177_s1 + $0x118] sm:$0xff]   ;;  %v930_v4 = vld [vmem:[%s1177_s1 + $0x110] sm:$0xff]   ;;  %v931_v5 = vld [vmem:[%s1177_s1 + $0x148] sm:$0xff]   ;;  %v70_v9 = vpack.c.bf16 %v50_v58, %v50_v58 }
  0x29   :  { %v932_v6 = vld [vmem:[%s1177_s1 + $0x108] sm:$0xff]   ;;  %v933_v7 = vld [vmem:[%s1177_s1 + $0x140] sm:$0xff]   ;;  %v641_v10 = vld [vmem:[%s1179_s3 + $0x18] sm:$0xff] }
  0x2a   :  { %v71_v63 = vpack.c.bf16 %v58_v61, %v58_v61  ;;  %v72_v0 = vpack.c.bf16 %v57_v60, %v57_v60  ;;  %v934_v8 = vld [vmem:[%s1177_s1 + $0x100] sm:$0xff]   ;;  %v640_v11 = vld [vmem:[%s1179_s3 + $0x10] sm:$0xff]  ;;  %v639_v12 = vld [vmem:[%s1179_s3 + $0x8] sm:$0xff] }
  0x2b   :  { %841 = vmatpush3.bf16.msra.mxu0 %v924_v56  ;;  %v638_v13 = vld [vmem:[%s1179_s3] sm:$0xff] }
  0x2c   :  { %842 = vmatprep.subr.bf16.mxu0 %v925_v59  ;;  %588 = vmatprep.mubr.bf16.mxu0 %v71_v63  ;;  %v739_v27 = vld [vmem:[%s1178_s2] ss:$0 sm:$0xff]  ;;  %s731_s2 = sshll.u32 %s962_s28, 4  ;;  %s732_s2 = int_to_ptr.vmem [resolvable:$true] %s731_s2 }
  0x2d   :  { %868 = vmatmul.mubr.msk.bf16.vlgmr.msra.gmra.mxu1 %vm472_vm1, %v72_v0  ;;  %v790_v39 = vld [vmem:[%s1180_s4] ss:$0 sm:$0xff]  ;;  %s937_s29 = scalar_lea.vmem %s732_s2, 32  ;;  %p942_p1 = scmp.lt.s32.totalorder %s732_s2, %s732_s2 }
  0x2e   :  { %879 = vmatprep.mubr.msk.f32.mxu1 %vm961_vm0, %v960_v40  ;;  %872 = vmatpush3.msra.mxu1 %v641_v10  ;;  %p938_p0 = scmp.ne.s32.totalorder %s732_s2, %s937_s29  ;;  %p943_p2 = scmp.lt.s32.totalorder %s937_s29, %s937_s29 }
  0x2f   :  { %843 = vmatpush3.bf16.msra.mxu0 %v926_v62  ;;  %873 = vmatprep.subr.mxu1 %v960_v40 }
  0x30   :  { %844 = vmatprep.subr.bf16.mxu0 %v927_v1  ;;  %874 = vmatpush3.msra.mxu1 %v640_v11  ;;  %p944_p3 = por %p943_p2, %p942_p1 }
  0x31   :  { %875 = vmatprep.subr.mxu1 %v960_v40 }
  0x32   :  { %876 = vmatpush3.msra.mxu1 %v639_v12  ;;  %p945_p4 = pnand %p944_p3, %p938_p0 }
  0x33   :  { %845 = vmatpush3.bf16.msra.mxu0 %v928_v2  ;;  %877 = vmatprep.subr.mxu1 %v960_v40 }
  0x34   :  { %846 = vmatprep.subr.bf16.mxu0 %v929_v3  ;;  %878 = vmatpush3.msra.mxu1 %v638_v13 }
  0x37   :  { %847 = vmatpush3.bf16.msra.mxu0 %v930_v4 }
  0x38   :  { %848 = vmatprep.subr.bf16.mxu0 %v931_v5 }
  0x3b   :  { %849 = vmatpush3.bf16.msra.mxu0 %v932_v6 }
  0x3c   :  { %850 = vmatprep.subr.bf16.mxu0 %v933_v7 }
  0x3f   :  { %851 = vmatpush3.bf16.msra.mxu0 %v934_v8 }
  0x42   :  { %589 = vmatmul.mubr.bf16.vlgmr.msra.gmra.mxu0 %v70_v9 }
  0xe2   :  { %v808_v14 = vpop.f32.mrf.mxu0 }
  0xe4   :  { %v830_v15 = vpop.f32.mrf.mxu1  ;;  %v809_v16 = vpop.f32.mrf.mxu0 }
  0xe5   :  { %v810_v26 = vadd.f32 %v809_v16, %v808_v14 }
  0xe6   :  { %v831_v17 = vpop.f32.mrf.mxu1  ;;  %v811_v18 = vpop.f32.mrf.mxu0 }
  0xe7   :  { %v511_v28 = vadd.f32 %v810_v26, %v739_v27  ;;  %v832_v29 = vadd.f32 %v831_v17, %v830_v15 }
  0xe8   :  { %v833_v19 = vpop.f32.mrf.mxu1  ;;  %v812_v20 = vpop.f32.mrf.mxu0 }
  0xe9   :  { %v551_v32 = vadd.f32 %v832_v29, %v511_v28 }
  0xea   :  { %v834_v21 = vpop.f32.mrf.mxu1 }
  0xed   :  { %v630_v22 = vpop.f32.mrf.mxu1 }
  0xef   :  { %v869_v23 = vpop.f32.mrf.mxu1 }
  0xf1   :  { %v633_v24 = vpop.f32.mrf.mxu1 }
  0xf3   :  { %v870_v25 = vpop.f32.mrf.mxu1 }
 0x102   :  { %v852_v30 = vpop.f32.mrf.mxu0 }
 0x104   :  { %v853_v31 = vpop.f32.mrf.mxu0 }
 0x105   :  { %v854_v33 = vadd.f32 %v853_v31, %v852_v30 }
 0x106   :  { %v855_v34 = vpop.f32.mrf.mxu0 }
 0x107   :  { %v591_v35 = vadd.f32 %v854_v33, %v551_v32 }
 0x108   :  { %v856_v36 = vpop.f32.mrf.mxu0 }
 0x109   :  { %v631_v37 = vadd.f32 %v630_v22, %v591_v35 }
 0x10b   :  { %vm636_vm3 = vcmp.gt.f32.partialorder %v631_v37, 0.0 }
 0x10c   :  { %v637_v38 = vsel %vm636_vm3, %v631_v37, 0.001 }
 0x10d   :  { %880 = vmatmul.mubr.msk.f32.vlgmr.msra.gmra.mxu1 %vm649_vm2, %v637_v38 }
 0x1cd   :  { %v719_v40 = vpop.f32.mrf.mxu1 }
 0x1ce   :  { %v720_v41 = vadd.f32 %v790_v39, %v719_v40 }
 0x1cf   :  { %v881_v42 = vpop.f32.mrf.mxu1 }
 0x1d0   :  { %724 = vst.msk [vmem:[#allocation2] sm:$0x3] %vm723_vm4, %v720_v41 }
 0x1d1   :  { %948 = shalt.err (!%p945_p4)
}
 0x1d2   :  { %734 = dma.vmem_to_hbm [thread:$0]  %s732_s2, 32, %s1181_s5, [#allocation3]  }
 0x1d3   :  { %957 = dma.done.wait [#allocation3], 32  }
 0x1d4   :  { %958 = vsyncadd [#allocation3], 4294967264 }
 0x1d5   :  { %738 = vsyncpa [#allocation3], 1 }

</bundles_post_ra>
